<compile_context>
chip_gen: v7x
topology: tpu7x:2x2x1
jax: 0.10.0
libtpu: 0.0.40
codegen_flags: <defaults>
</compile_context>

<pallas_src>
import math

import jax
import jax.numpy as jnp
from jax import lax
from jax.experimental import pallas as pl
from jax.experimental.pallas import tpu as pltpu

LEAKY_SLOPE = 0.01          # torch default for nn.LeakyReLU
BN_EPS = 1e-5               # torch default for nn.BatchNorm1d
SOFTPLUS_THRESH = 20.0      # torch default for nn.Softplus
HEAD_ROWS = 8               # sublane-aligned row count of the fused mu/std head
_ROW_VMEM_BUDGET = 36 << 20     # bytes of VMEM budgeted for batch-row-scaled data
_VMEM_LIMIT_BYTES = 48 << 20    # scoped VMEM limit (safe on v5e/v6e/v7x)


def _round_up(n, m):
    return ((n + m - 1) // m) * m


def _cdiv(a, b):
    return -(-a // b)


def _leaky_relu(x):
    # max-form: one VPU op fewer than where(cmp, x, slope*x)
    return jnp.maximum(x, LEAKY_SLOPE * x)


def _softplus(x):
    # matches torch.nn.Softplus(beta=1, threshold=20)
    return jnp.where(x > SOFTPLUS_THRESH, x,
                     jnp.log1p(jnp.exp(jnp.minimum(x, SOFTPLUS_THRESH))))


def encoder_kernel(x_ref, w1_ref, b1_ref, w2_ref, whT_ref, out_ref):
    # fc1 (+ folded bn1) -> LeakyReLU     (dropout1 = identity in eval)
    # b1 carries a 1.0 in pad channel N1 so h1[:, N1] == 1 (constant channel).
    x = x_ref[...].astype(w1_ref.dtype)
    h1 = jnp.dot(x, w1_ref[...], preferred_element_type=jnp.float32)
    h1 = _leaky_relu(h1 + b1_ref[...])

    # fc2 (+ folded bn2) -> LeakyReLU     (dropout2 = identity in eval)
    # fc2/bn2 bias is folded into w2 row N1 (multiplies the constant channel);
    # w2 col N2 propagates the constant-1 channel into h2.
    h2 = jnp.dot(h1.astype(w2_ref.dtype), w2_ref[...],
                 preferred_element_type=jnp.float32)
    h2 = _leaky_relu(h2)

    # Fused transposed head: (HEAD_ROWS, N2_p) x (tile_b, N2_p)^T -> (HEAD_ROWS,
    # tile_b); rows 0/1 are the mu/std pre-activations, head biases folded into
    # column N2 (constant channel of h2).  Lane-dense over batch.
    hdT = lax.dot_general(whT_ref[...], h2.astype(whT_ref.dtype),
                          (((1,), (1,)), ((), ())),
                          preferred_element_type=jnp.float32)
    out_ref[...] = _softplus(hdT)


def prepare_params(raw, use_bf16=True):
    """Fold eval-mode BN into the Linear layers, fuse the two heads into one
    transposed (HEAD_ROWS, N2_p) slab, fold fc2/head biases via a constant-1
    pad channel, and zero-pad feature dims to multiples of 128."""
    w1, b1 = raw["w1"], raw["b1"]            # (Cin, N1), (N1,)
    w2, b2 = raw["w2"], raw["b2"]            # (N1, N2), (N2,)
    Cin, N1 = w1.shape
    N2 = w2.shape[1]

    s1 = raw["g1"] * lax.rsqrt(raw["v1"] + BN_EPS)
    w1f = w1 * s1[None, :]
    b1f = (b1 - raw["m1"]) * s1 + raw["be1"]
    s2 = raw["g2"] * lax.rsqrt(raw["v2"] + BN_EPS)
    w2f = w2 * s2[None, :]
    b2f = (b2 - raw["m2"]) * s2 + raw["be2"]

    N1_p = _round_up(N1 + 1, 128)    # +1: constant-1 channel at index N1
    N2_p = _round_up(N2 + 1, 128)    # +1: constant-1 channel at index N2
    wdt = jnp.bfloat16 if use_bf16 else jnp.float32

    # w1: (Cin, N1_p); pad columns (incl. the constant channel column) are 0.
    w1p = jnp.zeros((Cin, N1_p), jnp.float32).at[:, :N1].set(w1f).astype(wdt)
    # b1: explicit f32 add; pad entry N1 := 1 -> h1[:, N1] == leaky_relu(1) == 1.
    b1p = (jnp.zeros((1, N1_p), jnp.float32)
           .at[0, :N1].set(b1f)
           .at[0, N1].set(1.0))
    # w2: (N1_p, N2_p); row N1 := folded fc2/bn2 bias; (N1, N2) entry := 1 so
    # h2[:, N2] == 1 (constant channel for the head bias).
    w2p = (jnp.zeros((N1_p, N2_p), jnp.float32)
           .at[:N1, :N2].set(w2f)
           .at[N1, :N2].set(b2f)
           .at[N1, N2].set(1.0)).astype(wdt)
    # Transposed fused head: rows 0/1 = w_mu^T / w_std^T, column N2 = biases.
    whT = (jnp.zeros((HEAD_ROWS, N2_p), jnp.float32)
           .at[0, :N2].set(raw["w_mu"][:, 0])
           .at[1, :N2].set(raw["w_std"][:, 0])
           .at[0, N2].set(raw["b_mu"][0])
           .at[1, N2].set(raw["b_std"][0])).astype(wdt)

    return {"Cin": Cin, "N1_p": N1_p, "N2_p": N2_p, "dtype": wdt,
            "w1": w1p, "b1": b1p, "w2": w2p, "whT": whT}


def _pick_tile(B, Cin, N1_p, N2_p):
    # Crude per-batch-row VMEM estimate (bytes): double-buffered f32 x tile,
    # in-kernel bf16 copy of x, f32 h1/h2 (+ bf16 casts), f32 output rows.
    per_row = 8 * Cin + 2 * Cin + 6 * (N1_p + N2_p) + 64
    vmem_cap = max(8, (_ROW_VMEM_BUDGET // per_row) // 8 * 8)
    if B <= 256:
        return min(_round_up(B, 8), vmem_cap)        # single grid step
    # >=2 "parallel" steps (v7x has two TensorCores); large tiles amortize the
    # ~0.35us/step pipeline overhead; cap at 2048 rows and by the VMEM budget.
    return min(_round_up(_cdiv(B, 2), 8), 2048, vmem_cap)


def encoder_forward(x, p, *, tile_b=None):
    """x: (B, Cin) float32. Returns (mu, std), each (B, 1) float32."""
    B, Cin = x.shape
    assert Cin == p["Cin"]
    N1_p, N2_p = p["N1_p"], p["N2_p"]

    if tile_b is None:
        tile_b = _pick_tile(B, Cin, N1_p, N2_p)
    grid_b = _cdiv(B, tile_b)

    flops = 2 * B * (Cin * N1_p + N1_p * N2_p + N2_p * HEAD_ROWS)
    bytes_accessed = (B * Cin * 4
                      + sum(int(p[k].size) * p[k].dtype.itemsize
                            for k in ("w1", "b1", "w2", "whT"))
                      + HEAD_ROWS * B * 4)
    cost = pl.CostEstimate(flops=flops,
                           transcendentals=2 * HEAD_ROWS * B,
                           bytes_accessed=bytes_accessed)

    def const(shape):
        return pl.BlockSpec(shape, lambda i: (0, 0))

    out = pl.pallas_call(
        encoder_kernel,
        out_shape=jax.ShapeDtypeStruct((HEAD_ROWS, B), jnp.float32),
        grid=(grid_b,),
        in_specs=[
            pl.BlockSpec((tile_b, Cin), lambda i: (i, 0)),   # x (f32, unpadded)
            const((Cin, N1_p)),                              # w1' (BN folded)
            const((1, N1_p)),                                # b1' (+ const chan)
            const((N1_p, N2_p)),                             # w2' (bias folded)
            const((HEAD_ROWS, N2_p)),                        # fused head^T
        ],
        out_specs=pl.BlockSpec((HEAD_ROWS, tile_b), lambda i: (0, i)),
        compiler_params=pltpu.CompilerParams(
            dimension_semantics=("parallel",),
            vmem_limit_bytes=_VMEM_LIMIT_BYTES),
        cost_estimate=cost,
    )(x, p["w1"], p["b1"], p["w2"], p["whT"])

    # Rows 0/1 of the (8, B) slab are mu/std; rows 2..7 are never consumed.
    mu = out[0].reshape(B, 1)
    std = out[1].reshape(B, 1)
    return mu, std


def init_raw_params(key, Cin, N1=500, N2=250):
    """Matches encoder.init_weights(): xavier_uniform Linear weights, zero
    bias; BN gamma=1, beta=0, running_mean=0, running_var=1.  Linear weights
    are stored as (in, out) == transpose of torch's (out, in)."""
    def xavier(k, fan_in, fan_out):
        bound = math.sqrt(6.0 / (fan_in + fan_out))
        return jax.random.uniform(k, (fan_in, fan_out), jnp.float32,
                                  minval=-bound, maxval=bound)

    k1, k2, k3, k4 = jax.random.split(key, 4)
    return {
        "w1": xavier(k1, Cin, N1), "b1": jnp.zeros((N1,), jnp.float32),
        "g1": jnp.ones((N1,), jnp.float32), "be1": jnp.zeros((N1,), jnp.float32),
        "m1": jnp.zeros((N1,), jnp.float32), "v1": jnp.ones((N1,), jnp.float32),
        "w2": xavier(k2, N1, N2), "b2": jnp.zeros((N2,), jnp.float32),
        "g2": jnp.ones((N2,), jnp.float32), "be2": jnp.zeros((N2,), jnp.float32),
        "m2": jnp.zeros((N2,), jnp.float32), "v2": jnp.ones((N2,), jnp.float32),
        "w_mu": xavier(k3, N2, 1), "b_mu": jnp.zeros((1,), jnp.float32),
        "w_std": xavier(k4, N2, 1), "b_std": jnp.zeros((1,), jnp.float32),
    }


def encoder_reference(x, raw):
    """Pure-JAX f32 reference of the eval-mode PyTorch forward."""
    def lrelu(v):
        return jnp.where(v >= 0, v, LEAKY_SLOPE * v)
    def sp(v):
        return jnp.where(v > SOFTPLUS_THRESH, v,
                         jnp.log1p(jnp.exp(jnp.minimum(v, SOFTPLUS_THRESH))))
    s1 = raw["g1"] * lax.rsqrt(raw["v1"] + BN_EPS)
    h1 = lrelu((x @ raw["w1"] + raw["b1"] - raw["m1"]) * s1 + raw["be1"])
    s2 = raw["g2"] * lax.rsqrt(raw["v2"] + BN_EPS)
    h2 = lrelu((h1 @ raw["w2"] + raw["b2"] - raw["m2"]) * s2 + raw["be2"])
    mu = sp(h2 @ raw["w_mu"] + raw["b_mu"])
    std = sp(h2 @ raw["w_std"] + raw["b_std"])
    return mu, std


if __name__ == "__main__":
    B, Cin, N1, N2 = 8, 64, 500, 250

    key = jax.random.PRNGKey(0)
    k_x, k_p = jax.random.split(key)
    x = jax.random.normal(k_x, (B, Cin), jnp.float32)
    raw = init_raw_params(k_p, Cin, N1, N2)
    params = prepare_params(raw, use_bf16=True)

    mu, std = encoder_forward(x, params)
    mu = jax.block_until_ready(mu)
    std = jax.block_until_ready(std)

    assert mu.shape == (B, 1) and std.shape == (B, 1)
    # finiteness checked on the sliced (valid) outputs only
    assert bool(jnp.all(jnp.isfinite(mu))) and bool(jnp.all(jnp.isfinite(std)))
    # softplus outputs are strictly positive
    assert bool(jnp.all(mu > 0)) and bool(jnp.all(std > 0))

    # validate against the f32 reference (loose tolerance covers bf16 matmuls)
    mu_ref, std_ref = encoder_reference(x, raw)
    assert bool(jnp.allclose(mu, mu_ref, rtol=5e-2, atol=1e-2))
    assert bool(jnp.allclose(std, std_ref, rtol=5e-2, atol=1e-2))

    print("KERNEL_OK")
</pallas_src>

<mosaic_0001>
module attributes {stable_mosaic.version = 11 : i64} {
  func.func @encoder_kernel(%arg0: i32, %arg1: memref<8x64xf32, #tpu.memory_space<vmem>>, %arg2: memref<64x512xbf16, #tpu.memory_space<vmem>>, %arg3: memref<1x512xf32, #tpu.memory_space<vmem>>, %arg4: memref<512x256xbf16, #tpu.memory_space<vmem>>, %arg5: memref<8x256xbf16, #tpu.memory_space<vmem>>, %arg6: memref<8x8xf32, #tpu.memory_space<vmem>>) attributes {dimension_semantics = [#tpu.dimension_semantics<parallel>], iteration_bounds = array<i64: 1>, scalar_prefetch = 0 : i64, scratch_operands = 0 : i64, tpu.core_type = #tpu.core_type<tc>, window_params = [{transform_indices = @transform_0, window_bounds = array<i64: 8, 64>}, {pipeline_mode = #tpu.pipeline_mode<synchronous>, transform_indices = @transform_1, window_bounds = array<i64: 64, 512>}, {pipeline_mode = #tpu.pipeline_mode<synchronous>, transform_indices = @transform_2, window_bounds = array<i64: 1, 512>}, {pipeline_mode = #tpu.pipeline_mode<synchronous>, transform_indices = @transform_3, window_bounds = array<i64: 512, 256>}, {pipeline_mode = #tpu.pipeline_mode<synchronous>, transform_indices = @transform_4, window_bounds = array<i64: 8, 256>}, {transform_indices = @transform_5, window_bounds = array<i64: 8, 8>}]} {
    %c0 = arith.constant 0 : index
    %c0_0 = arith.constant 0 : index
    %0 = vector.load %arg1[%c0, %c0_0] : memref<8x64xf32, #tpu.memory_space<vmem>>, vector<8x64xf32>
    %1 = arith.truncf %0 : vector<8x64xf32> to vector<8x64xbf16>
    %c0_1 = arith.constant 0 : index
    %c0_2 = arith.constant 0 : index
    %2 = vector.load %arg2[%c0_1, %c0_2] : memref<64x512xbf16, #tpu.memory_space<vmem>>, vector<64x512xbf16>
    %cst = arith.constant dense<0.000000e+00> : vector<8x512xf32>
    %3 = tpu.matmul %1, %2, %cst {dimension_numbers = #tpu.dot_dimension_numbers<[1], [0], [0], [1], [0, 0, 1, 1], [], []>} : vector<8x64xbf16>, vector<64x512xbf16>, vector<8x512xf32> -> vector<8x512xf32>
    %c0_3 = arith.constant 0 : index
    %c0_4 = arith.constant 0 : index
    %4 = vector.load %arg3[%c0_3, %c0_4] : memref<1x512xf32, #tpu.memory_space<vmem>>, vector<1x512xf32>
    %5 = vector.broadcast %4 : vector<1x512xf32> to vector<8x512xf32>
    %6 = arith.addf %3, %5 : vector<8x512xf32>
    %cst_5 = arith.constant 0.00999999977 : f32
    %7 = vector.broadcast %cst_5 : f32 to vector<8x512xf32>
    %8 = arith.mulf %7, %6 : vector<8x512xf32>
    %9 = arith.maximumf %6, %8 : vector<8x512xf32>
    %10 = arith.truncf %9 : vector<8x512xf32> to vector<8x512xbf16>
    %c0_6 = arith.constant 0 : index
    %c0_7 = arith.constant 0 : index
    %11 = vector.load %arg4[%c0_6, %c0_7] : memref<512x256xbf16, #tpu.memory_space<vmem>>, vector<512x256xbf16>
    %cst_8 = arith.constant dense<0.000000e+00> : vector<8x256xf32>
    %12 = tpu.matmul %10, %11, %cst_8 {dimension_numbers = #tpu.dot_dimension_numbers<[1], [0], [0], [1], [0, 0, 1, 1], [], []>} : vector<8x512xbf16>, vector<512x256xbf16>, vector<8x256xf32> -> vector<8x256xf32>
    %cst_9 = arith.constant 0.00999999977 : f32
    %13 = vector.broadcast %cst_9 : f32 to vector<8x256xf32>
    %14 = arith.mulf %13, %12 : vector<8x256xf32>
    %15 = arith.maximumf %12, %14 : vector<8x256xf32>
    %c0_10 = arith.constant 0 : index
    %c0_11 = arith.constant 0 : index
    %16 = vector.load %arg5[%c0_10, %c0_11] : memref<8x256xbf16, #tpu.memory_space<vmem>>, vector<8x256xbf16>
    %17 = arith.truncf %15 : vector<8x256xf32> to vector<8x256xbf16>
    %cst_12 = arith.constant dense<0.000000e+00> : vector<8x8xf32>
    %18 = tpu.matmul %16, %17, %cst_12 {dimension_numbers = #tpu.dot_dimension_numbers<[1], [1], [0], [0], [0, 0, 1, 0], [], []>} : vector<8x256xbf16>, vector<8x256xbf16>, vector<8x8xf32> -> vector<8x8xf32>
    %cst_13 = arith.constant 2.000000e+01 : f32
    %19 = vector.broadcast %cst_13 : f32 to vector<8x8xf32>
    %20 = arith.cmpf ogt, %18, %19 : vector<8x8xf32>
    %cst_14 = arith.constant 2.000000e+01 : f32
    %21 = vector.broadcast %cst_14 : f32 to vector<8x8xf32>
    %22 = arith.minimumf %18, %21 : vector<8x8xf32>
    %23 = math.exp %22 : vector<8x8xf32>
    %24 = math.log1p %23 : vector<8x8xf32>
    %25 = arith.select %20, %18, %24 : vector<8x8xi1>, vector<8x8xf32>
    %c0_15 = arith.constant 0 : index
    %c0_16 = arith.constant 0 : index
    %26 = vector.load %arg6[%c0_15, %c0_16] : memref<8x8xf32, #tpu.memory_space<vmem>>, vector<8x8xf32>
    tpu.vector_store %arg6[%c0_15, %c0_16], %25 {strides = array<i32>} : memref<8x8xf32, #tpu.memory_space<vmem>>, vector<8x8xf32>,
    return
  }
  func.func @transform_0(%arg0: i32) -> (i32, i32) {
    %c0_i32 = arith.constant 0 : i32
    %c0_i32_0 = arith.constant 0 : i32
    return %arg0, %c0_i32 : i32, i32
  }
  func.func @transform_1(%arg0: i32) -> (i32, i32) {
    %c0_i32 = arith.constant 0 : i32
    %c0_i32_0 = arith.constant 0 : i32
    %c0_i32_1 = arith.constant 0 : i32
    return %c0_i32, %c0_i32_0 : i32, i32
  }
  func.func @transform_2(%arg0: i32) -> (i32, i32) {
    %c0_i32 = arith.constant 0 : i32
    %c0_i32_0 = arith.constant 0 : i32
    %c0_i32_1 = arith.constant 0 : i32
    return %c0_i32, %c0_i32_0 : i32, i32
  }
  func.func @transform_3(%arg0: i32) -> (i32, i32) {
    %c0_i32 = arith.constant 0 : i32
    %c0_i32_0 = arith.constant 0 : i32
    %c0_i32_1 = arith.constant 0 : i32
    return %c0_i32, %c0_i32_0 : i32, i32
  }
  func.func @transform_4(%arg0: i32) -> (i32, i32) {
    %c0_i32 = arith.constant 0 : i32
    %c0_i32_0 = arith.constant 0 : i32
    %c0_i32_1 = arith.constant 0 : i32
    return %c0_i32, %c0_i32_0 : i32, i32
  }
  func.func @transform_5(%arg0: i32) -> (i32, i32) {
    %c0_i32 = arith.constant 0 : i32
    %c0_i32_0 = arith.constant 0 : i32
    return %c0_i32, %arg0 : i32, i32
  }
}

</mosaic_0001>

<bundles_post_ra>
// kernel: tpu_custom_call.1
= control target key start
LH: loop header
LB: loop body
LE: loop exit
PB: predicated region body
PF: predicated region fallthrough
CT: control target
= control target key end

     0   :  { %10 = vsyncpa [#allocation3], 0  ;;  %s1239_s0 = inlined_call_operand.hbm [shape: f32[8,64], index: 0, kind: input, shape index: {}]   ;;  %s1240_s1 = inlined_call_operand.hbm [shape: bf16[64,512], index: 1, kind: input, shape index: {}]   ;;  %s1241_s2 = inlined_call_operand.vmem [shape: f32[1,512], index: 2, kind: input, shape index: {}]   ;;  %s1242_s3 = inlined_call_operand.hbm [shape: bf16[512,256], index: 3, kind: input, shape index: {}]   ;;  %s1243_s4 = inlined_call_operand.vmem [shape: bf16[8,256], index: 4, kind: input, shape index: {}]   ;;  %s1244_s5 = inlined_call_operand.hbm [shape: f32[8,8], index: 5, kind: output, shape index: {}]  }
   0x1   :  { %11 = vsyncpa [#allocation6], 0 }
   0x2   :  { %12 = vsyncpa [#allocation4], 0  ;;  %s1146_s18 = smov [#allocation5]   ;;  %s1052_s22 = scalar_lea.hbm %s1240_s1, 2048 }
   0x3   :  { %s28_s19 = sshll.u32 %s1146_s18, 4  ;;  %p1053_p0 = scmp.ne.s32.totalorder %s1240_s1, %s1052_s22  ;;  %s29_s19 = int_to_ptr.vmem [resolvable:$true] %s28_s19 }
   0x4   :  { %p1056_p1 = scmp.lt.u32.totalorder %s1052_s22, %s1240_s1 }
   0x6   :  { %p1058_p2 = pnand %p1056_p1, %p1053_p0 }
   0x8   :  { %1061 = shalt.err (!%p1058_p2)
}
   0x9   :  { %s1062_s27 = scalar_lea.vmem %s29_s19, 2048  ;;  %p1067_p4 = scmp.lt.s32.totalorder %s29_s19, %s29_s19 }
   0xa   :  { %p1063_p3 = scmp.ne.s32.totalorder %s29_s19, %s1062_s27  ;;  %p1068_p5 = scmp.lt.s32.totalorder %s1062_s27, %s1062_s27 }
   0xc   :  { %p1069_p6 = por %p1068_p5, %p1067_p4 }
   0xe   :  { %p1070_p7 = pnand %p1069_p6, %p1063_p3 }
  0x10   :  { %1073 = shalt.err (!%p1070_p7)
}
  0x11   :  { %s1147_s28 = smov 256   ;;  %s1148_s29 = smov 16  }
  0x12   :  { %34 = dma.hbm_to_vmem [thread:$0]  %s1240_s1, 2048, %s29_s19, [#allocation6], %s1147_s28, %s1147_s28, %s1148_s29  }
  0x13   :  { %s1149_s7 = smov [#allocation2]   ;;  %s1150_s9 = smov [#allocation7]  }
  0x14   :  { %s19_s8 = sshll.u32 %s1149_s7, 4  ;;  %s42_s10 = sshll.u32 %s1150_s9, 4  ;;  %s20_s8 = int_to_ptr.vmem [resolvable:$true] %s19_s8  ;;  %s43_s10 = int_to_ptr.vmem [resolvable:$true] %s42_s10 }
  0x15   :  { %s1074_s13 = scalar_lea.hbm %s1239_s0, 128 }
  0x16   :  { %p1075_p8 = scmp.ne.s32.totalorder %s1239_s0, %s1074_s13  ;;  %p1078_p9 = scmp.lt.u32.totalorder %s1074_s13, %s1239_s0 }
  0x18   :  { %p1080_p10 = pnand %p1078_p9, %p1075_p8 }
  0x1a   :  { %1083 = shalt.err (!%p1080_p10)
}
  0x1b   :  { %s1084_s1 = scalar_lea.vmem %s20_s8, 128  ;;  %p1089_p12 = scmp.lt.s32.totalorder %s20_s8, %s20_s8 }
  0x1c   :  { %p1085_p11 = scmp.ne.s32.totalorder %s20_s8, %s1084_s1  ;;  %p1090_p13 = scmp.lt.s32.totalorder %s1084_s1, %s1084_s1 }
  0x1e   :  { %p1091_p0 = por %p1090_p13, %p1089_p12 }
  0x20   :  { %p1092_p1 = pnand %p1091_p0, %p1085_p11 }
  0x22   :  { %1095 = shalt.err (!%p1092_p1)
}
  0x23   :  { %22 = dma.hbm_to_vmem [thread:$0]  %s1239_s0, 128, %s20_s8, [#allocation3]  }
  0x24   :  { %s1096_s22 = scalar_lea.hbm %s1242_s3, 8192 }
  0x25   :  { %p1097_p2 = scmp.ne.s32.totalorder %s1242_s3, %s1096_s22  ;;  %p1100_p3 = scmp.lt.u32.totalorder %s1096_s22, %s1242_s3 }
  0x27   :  { %p1102_p4 = pnand %p1100_p3, %p1097_p2 }
  0x29   :  { %1105 = shalt.err (!%p1102_p4)
}
  0x2a   :  { %s1106_s27 = scalar_lea.vmem %s43_s10, 8192  ;;  %p1111_p6 = scmp.lt.s32.totalorder %s43_s10, %s43_s10 }
  0x2b   :  { %p1107_p5 = scmp.ne.s32.totalorder %s43_s10, %s1106_s27  ;;  %p1112_p7 = scmp.lt.s32.totalorder %s1106_s27, %s1106_s27 }
  0x2d   :  { %p1113_p8 = por %p1112_p7, %p1111_p6 }
  0x2f   :  { %p1114_p9 = pnand %p1113_p8, %p1107_p5 }
  0x31   :  { %1117 = shalt.err (!%p1114_p9)
}
  0x32   :  { %s1151_s0 = smov 128   ;;  %s1152_s28 = smov 8  }
  0x33   :  { %48 = dma.hbm_to_vmem [thread:$0]  %s1242_s3, 8192, %s43_s10, [#allocation6], %s1151_s0, %s1151_s0, %s1152_s28  }
  0x34   :  { %1140 = dma.done.wait [#allocation3], 128  }
  0x35   :  { %1141 = vsyncadd [#allocation3], 4294967168 }
  0x36   :  { %1142 = dma.done.wait [#allocation6], 10240  }
  0x37   :  { %1143 = vsyncadd [#allocation6], 4294957056  ;;  %v1153_v0 = vmov 0   ;;  %v926_v1 = vld [vmem:[#allocation5 + $0x4] ss:$16 sps:$4 sm:$0xff]   ;;  %v61_v17 = vld [vmem:[#allocation2] sm:$0xff] }
  0x38   :  { %217 = vmatprep.mubr.bf16.mxu0 %v1153_v0  ;;  %258 = vmatprep.mubr.bf16.mxu1 %v1153_v0  ;;  %v928_v2 = vld [vmem:[#allocation5 + $0xc] ss:$16 sps:$4 sm:$0xff]   ;;  %v930_v3 = vld [vmem:[#allocation5] ss:$16 sps:$4 sm:$0xff]   ;;  %v931_v4 = vld [vmem:[#allocation5 + $0x8] ss:$16 sps:$4 sm:$0xff]   ;;  %v62_v20 = vpack.c.bf16 %v61_v17, %v61_v17 }
  0x39   :  { %185 = vmatprep.subr.bf16.mxu0 %v926_v1  ;;  %226 = vmatprep.subr.bf16.mxu1 %v928_v2  ;;  %v932_v5 = vld [vmem:[#allocation5 + $0x24] ss:$16 sps:$4 sm:$0xff]   ;;  %v934_v6 = vld [vmem:[#allocation5 + $0x2c] ss:$16 sps:$4 sm:$0xff]   ;;  %v936_v7 = vld [vmem:[#allocation5 + $0x20] ss:$16 sps:$4 sm:$0xff]  }
  0x3a   :  { %186 = vmatpush1.bf16.msra.mxu0 %v930_v3  ;;  %227 = vmatpush1.bf16.msra.mxu1 %v931_v4  ;;  %v937_v8 = vld [vmem:[#allocation5 + $0x28] ss:$16 sps:$4 sm:$0xff]   ;;  %v938_v9 = vld [vmem:[#allocation5 + $0x44] ss:$16 sps:$4 sm:$0xff]   ;;  %v940_v10 = vld [vmem:[#allocation5 + $0x4c] ss:$16 sps:$4 sm:$0xff]  }
  0x3b   :  { %187 = vmatprep.subr.bf16.mxu0 %v932_v5  ;;  %228 = vmatprep.subr.bf16.mxu1 %v934_v6  ;;  %v942_v11 = vld [vmem:[#allocation5 + $0x40] ss:$16 sps:$4 sm:$0xff]   ;;  %v943_v12 = vld [vmem:[#allocation5 + $0x48] ss:$16 sps:$4 sm:$0xff]   ;;  %v944_v13 = vld [vmem:[#allocation5 + $0x64] ss:$16 sps:$4 sm:$0xff]  }
  0x3c   :  { %v946_v14 = vld [vmem:[#allocation5 + $0x6c] ss:$16 sps:$4 sm:$0xff]   ;;  %v948_v15 = vld [vmem:[#allocation5 + $0x60] ss:$16 sps:$4 sm:$0xff]   ;;  %v949_v16 = vld [vmem:[#allocation5 + $0x68] ss:$16 sps:$4 sm:$0xff]  }
  0x3d   :  { %v952_v18 = vld [vmem:[#allocation7 + $0x4] ss:$8 sps:$4 sm:$0xff]   ;;  %v950_v21 = vld [vmem:[#allocation7] ss:$8 sps:$4 sm:$0xff]   ;;  %vm181_vm0 = vcmask 523264   ;;  %vm813_vm2 = vcmask 64512  }
  0x3e   :  { %188 = vmatpush1.bf16.msra.mxu0 %v936_v7  ;;  %229 = vmatpush1.bf16.msra.mxu1 %v937_v8  ;;  %v955_v19 = vld [vmem:[#allocation7 + $0x104] ss:$8 sps:$4 sm:$0xff]   ;;  %v953_v22 = vld [vmem:[#allocation7 + $0x100] ss:$8 sps:$4 sm:$0xff]   ;;  %v958_v23 = vld [vmem:[#allocation7 + $0x14] ss:$8 sps:$4 sm:$0xff]  }
  0x3f   :  { %189 = vmatprep.subr.bf16.mxu0 %v938_v9  ;;  %230 = vmatprep.subr.bf16.mxu1 %v940_v10  ;;  %v961_v24 = vld [vmem:[#allocation7 + $0x114] ss:$8 sps:$4 sm:$0xff]   ;;  %v956_v25 = vld [vmem:[#allocation7 + $0x10] ss:$8 sps:$4 sm:$0xff]   ;;  %v964_v27 = vld [vmem:[#allocation7 + $0x24] ss:$8 sps:$4 sm:$0xff]  }
  0x40   :  { %v959_v26 = vld [vmem:[#allocation7 + $0x110] ss:$8 sps:$4 sm:$0xff]   ;;  %v967_v28 = vld [vmem:[#allocation7 + $0x124] ss:$8 sps:$4 sm:$0xff]   ;;  %v962_v29 = vld [vmem:[#allocation7 + $0x20] ss:$8 sps:$4 sm:$0xff]  }
  0x41   :  { %v965_v30 = vld [vmem:[#allocation7 + $0x120] ss:$8 sps:$4 sm:$0xff]   ;;  %v970_v31 = vld [vmem:[#allocation7 + $0x34] ss:$8 sps:$4 sm:$0xff]   ;;  %v968_v33 = vld [vmem:[#allocation7 + $0x30] ss:$8 sps:$4 sm:$0xff]  }
  0x42   :  { %190 = vmatpush1.bf16.msra.mxu0 %v942_v11  ;;  %231 = vmatpush1.bf16.msra.mxu1 %v943_v12  ;;  %v973_v32 = vld [vmem:[#allocation7 + $0x134] ss:$8 sps:$4 sm:$0xff]   ;;  %v971_v34 = vld [vmem:[#allocation7 + $0x130] ss:$8 sps:$4 sm:$0xff]   ;;  %v976_v35 = vld [vmem:[#allocation7 + $0x44] ss:$8 sps:$4 sm:$0xff]  }
  0x43   :  { %191 = vmatprep.subr.bf16.mxu0 %v944_v13  ;;  %232 = vmatprep.subr.bf16.mxu1 %v946_v14  ;;  %v979_v36 = vld [vmem:[#allocation7 + $0x144] ss:$8 sps:$4 sm:$0xff]   ;;  %v974_v37 = vld [vmem:[#allocation7 + $0x40] ss:$8 sps:$4 sm:$0xff]   ;;  %v982_v39 = vld [vmem:[#allocation7 + $0x54] ss:$8 sps:$4 sm:$0xff]  }
  0x44   :  { %v977_v38 = vld [vmem:[#allocation7 + $0x140] ss:$8 sps:$4 sm:$0xff]   ;;  %v985_v40 = vld [vmem:[#allocation7 + $0x154] ss:$8 sps:$4 sm:$0xff]   ;;  %v980_v41 = vld [vmem:[#allocation7 + $0x50] ss:$8 sps:$4 sm:$0xff]  }
  0x45   :  { %v983_v42 = vld [vmem:[#allocation7 + $0x150] ss:$8 sps:$4 sm:$0xff]   ;;  %v988_v43 = vld [vmem:[#allocation7 + $0x64] ss:$8 sps:$4 sm:$0xff]   ;;  %v986_v45 = vld [vmem:[#allocation7 + $0x60] ss:$8 sps:$4 sm:$0xff]  }
  0x46   :  { %192 = vmatpush1.bf16.msra.mxu0 %v948_v15  ;;  %233 = vmatpush1.bf16.msra.mxu1 %v949_v16  ;;  %v991_v44 = vld [vmem:[#allocation7 + $0x164] ss:$8 sps:$4 sm:$0xff]   ;;  %v989_v46 = vld [vmem:[#allocation7 + $0x160] ss:$8 sps:$4 sm:$0xff]   ;;  %v994_v47 = vld [vmem:[#allocation7 + $0x74] ss:$8 sps:$4 sm:$0xff]  }
  0x47   :  { %663 = vmatprep.subr.bf16.mxu1 %v952_v18  ;;  %704 = vmatprep.subr.bf16.mxu0 %v955_v19  ;;  %v997_v48 = vld [vmem:[#allocation7 + $0x174] ss:$8 sps:$4 sm:$0xff]   ;;  %v992_v49 = vld [vmem:[#allocation7 + $0x70] ss:$8 sps:$4 sm:$0xff]   ;;  %v1000_v51 = vld [vmem:[#allocation7 + $0x84] ss:$8 sps:$4 sm:$0xff]   ;;  %v81_v19 = vlaneseq }
  0x48   :  { %v995_v50 = vld [vmem:[#allocation7 + $0x170] ss:$8 sps:$4 sm:$0xff]   ;;  %v1003_v52 = vld [vmem:[#allocation7 + $0x184] ss:$8 sps:$4 sm:$0xff]   ;;  %v998_v53 = vld [vmem:[#allocation7 + $0x80] ss:$8 sps:$4 sm:$0xff]  }
  0x49   :  { %847 = vmatmul.mubr.msk.bf16.vlgmr.msra.gmra.mrb[0].mxu0 %vm181_vm0, %v62_v20  ;;  %848 = vmatmul.mubr.msk.bf16.vlgmr.msra.gmra.mrb[0].mxu1 %vm181_vm0, %v62_v20  ;;  %v1001_v54 = vld [vmem:[#allocation7 + $0x180] ss:$8 sps:$4 sm:$0xff]   ;;  %v1006_v55 = vld [vmem:[#allocation7 + $0x94] ss:$8 sps:$4 sm:$0xff]   ;;  %v1004_v57 = vld [vmem:[#allocation7 + $0x90] ss:$8 sps:$4 sm:$0xff]  }
  0x4a   :  { %664 = vmatpush1.bf16.msra.mxu1 %v950_v21  ;;  %705 = vmatpush1.bf16.msra.mxu0 %v953_v22  ;;  %v1009_v56 = vld [vmem:[#allocation7 + $0x194] ss:$8 sps:$4 sm:$0xff]   ;;  %v1007_v58 = vld [vmem:[#allocation7 + $0x190] ss:$8 sps:$4 sm:$0xff]   ;;  %v1012_v59 = vld [vmem:[#allocation7 + $0xa4] ss:$8 sps:$4 sm:$0xff]  }
  0x4b   :  { %665 = vmatprep.subr.bf16.mxu1 %v958_v23  ;;  %706 = vmatprep.subr.bf16.mxu0 %v961_v24  ;;  %v1015_v60 = vld [vmem:[#allocation7 + $0x1a4] ss:$8 sps:$4 sm:$0xff]   ;;  %v1010_v61 = vld [vmem:[#allocation7 + $0xa0] ss:$8 sps:$4 sm:$0xff]   ;;  %v1018_v63 = vld [vmem:[#allocation7 + $0xb4] ss:$8 sps:$4 sm:$0xff]  }
  0x4c   :  { %v1013_v62 = vld [vmem:[#allocation7 + $0x1a0] ss:$8 sps:$4 sm:$0xff]   ;;  %v1021_v0 = vld [vmem:[#allocation7 + $0x1b4] ss:$8 sps:$4 sm:$0xff]   ;;  %v1016_v1 = vld [vmem:[#allocation7 + $0xb0] ss:$8 sps:$4 sm:$0xff]  }
  0x4d   :  { %v1019_v2 = vld [vmem:[#allocation7 + $0x1b0] ss:$8 sps:$4 sm:$0xff]   ;;  %v1024_v3 = vld [vmem:[#allocation7 + $0xc4] ss:$8 sps:$4 sm:$0xff]   ;;  %v1022_v5 = vld [vmem:[#allocation7 + $0xc0] ss:$8 sps:$4 sm:$0xff]  }
  0x4e   :  { %666 = vmatpush1.bf16.msra.mxu1 %v956_v25  ;;  %707 = vmatpush1.bf16.msra.mxu0 %v959_v26  ;;  %v1027_v4 = vld [vmem:[#allocation7 + $0x1c4] ss:$8 sps:$4 sm:$0xff]   ;;  %v1025_v6 = vld [vmem:[#allocation7 + $0x1c0] ss:$8 sps:$4 sm:$0xff]   ;;  %v1030_v7 = vld [vmem:[#allocation7 + $0xd4] ss:$8 sps:$4 sm:$0xff]  }
  0x4f   :  { %667 = vmatprep.subr.bf16.mxu1 %v964_v27  ;;  %708 = vmatprep.subr.bf16.mxu0 %v967_v28  ;;  %v1033_v8 = vld [vmem:[#allocation7 + $0x1d4] ss:$8 sps:$4 sm:$0xff]   ;;  %v1028_v9 = vld [vmem:[#allocation7 + $0xd0] ss:$8 sps:$4 sm:$0xff]   ;;  %v1036_v11 = vld [vmem:[#allocation7 + $0xe4] ss:$8 sps:$4 sm:$0xff]  }
  0x50   :  { %v1031_v10 = vld [vmem:[#allocation7 + $0x1d0] ss:$8 sps:$4 sm:$0xff]   ;;  %v1039_v12 = vld [vmem:[#allocation7 + $0x1e4] ss:$8 sps:$4 sm:$0xff]   ;;  %v1034_v13 = vld [vmem:[#allocation7 + $0xe0] ss:$8 sps:$4 sm:$0xff]  }
  0x51   :  { %v1037_v14 = vld [vmem:[#allocation7 + $0x1e0] ss:$8 sps:$4 sm:$0xff]   ;;  %v1042_v15 = vld [vmem:[#allocation7 + $0xf4] ss:$8 sps:$4 sm:$0xff]   ;;  %v1040_v17 = vld [vmem:[#allocation7 + $0xf0] ss:$8 sps:$4 sm:$0xff]  }
  0x52   :  { %668 = vmatpush1.bf16.msra.mxu1 %v962_v29  ;;  %709 = vmatpush1.bf16.msra.mxu0 %v965_v30  ;;  %v1045_v16 = vld [vmem:[#allocation7 + $0x1f4] ss:$8 sps:$4 sm:$0xff]   ;;  %v1043_v18 = vld [vmem:[#allocation7 + $0x1f0] ss:$8 sps:$4 sm:$0xff]   ;;  %v82_v20 = vshrl.u32 %v81_v19, 7 }
  0x53   :  { %669 = vmatprep.subr.bf16.mxu1 %v970_v31  ;;  %710 = vmatprep.subr.bf16.mxu0 %v973_v32  ;;  %v79_v23 = vld [vmem:[%s1241_s2] sm:$0xf] }
  0x54   :  { %v83_v21 = vsub.s32 0, %v82_v20  ;;  %v91_v22 = vsub.s32 2, %v82_v20  ;;  %v87_v24 = vsub.s32 1, %v82_v20  ;;  %v95_v25 = vsub.s32 3, %v82_v20 }
  0x56   :  { %670 = vmatpush1.bf16.msra.mxu1 %v968_v33  ;;  %711 = vmatpush1.bf16.msra.mxu0 %v971_v34  ;;  %v84_v26 = vrot.slane %v79_v23, %v83_v21  ;;  %v92_v27 = vrot.slane %v79_v23, %v91_v22  ;;  %v88_v28 = vrot.slane %v79_v23, %v87_v24 }
  0x57   :  { %671 = vmatprep.subr.bf16.mxu1 %v976_v35  ;;  %712 = vmatprep.subr.bf16.mxu0 %v979_v36  ;;  %v96_v29 = vrot.slane %v79_v23, %v95_v25 }
  0x5a   :  { %672 = vmatpush1.bf16.msra.mxu1 %v974_v37  ;;  %713 = vmatpush1.bf16.msra.mxu0 %v977_v38 }
  0x5b   :  { %673 = vmatprep.subr.bf16.mxu1 %v982_v39  ;;  %714 = vmatprep.subr.bf16.mxu0 %v985_v40 }
  0x5e   :  { %674 = vmatpush1.bf16.msra.mxu1 %v980_v41  ;;  %715 = vmatpush1.bf16.msra.mxu0 %v983_v42 }
  0x5f   :  { %675 = vmatprep.subr.bf16.mxu1 %v988_v43  ;;  %716 = vmatprep.subr.bf16.mxu0 %v991_v44 }
  0x62   :  { %676 = vmatpush1.bf16.msra.mxu1 %v986_v45  ;;  %717 = vmatpush1.bf16.msra.mxu0 %v989_v46 }
  0x63   :  { %677 = vmatprep.subr.bf16.mxu1 %v994_v47  ;;  %718 = vmatprep.subr.bf16.mxu0 %v997_v48 }
  0x66   :  { %678 = vmatpush1.bf16.msra.mxu1 %v992_v49  ;;  %719 = vmatpush1.bf16.msra.mxu0 %v995_v50 }
  0x67   :  { %679 = vmatprep.subr.bf16.mxu1 %v1000_v51  ;;  %720 = vmatprep.subr.bf16.mxu0 %v1003_v52 }
  0x6a   :  { %680 = vmatpush1.bf16.msra.mxu1 %v998_v53  ;;  %721 = vmatpush1.bf16.msra.mxu0 %v1001_v54  ;;  %v749_v54 = vld [vmem:[%s1243_s4] sm:$0xff]  ;;  %s1154_s4 = smov [#allocation8]  }
  0x6b   :  { %681 = vmatprep.subr.bf16.mxu1 %v1006_v55  ;;  %722 = vmatprep.subr.bf16.mxu0 %v1009_v56  ;;  %v914_v55 = vcombine.high %v749_v54, %v749_v54  ;;  %s821_s8 = sshll.u32 %s1154_s4, 4  ;;  %s822_s8 = int_to_ptr.vmem [resolvable:$true] %s821_s8 }
  0x6c   :  { %s1118_s9 = scalar_lea.vmem %s822_s8, 128  ;;  %p1123_p11 = scmp.lt.s32.totalorder %s822_s8, %s822_s8 }
  0x6d   :  { %p1119_p10 = scmp.ne.s32.totalorder %s822_s8, %s1118_s9  ;;  %p1124_p12 = scmp.lt.s32.totalorder %s1118_s9, %s1118_s9 }
  0x6e   :  { %682 = vmatpush1.bf16.msra.mxu1 %v1004_v57  ;;  %723 = vmatpush1.bf16.msra.mxu0 %v1007_v58 }
  0x6f   :  { %683 = vmatprep.subr.bf16.mxu1 %v1012_v59  ;;  %724 = vmatprep.subr.bf16.mxu0 %v1015_v60  ;;  %p1125_p13 = por %p1124_p12, %p1123_p11 }
  0x71   :  { %p1126_p0 = pnand %p1125_p13, %p1119_p10 }
  0x72   :  { %684 = vmatpush1.bf16.msra.mxu1 %v1010_v61  ;;  %725 = vmatpush1.bf16.msra.mxu0 %v1013_v62 }
  0x73   :  { %685 = vmatprep.subr.bf16.mxu1 %v1018_v63  ;;  %726 = vmatprep.subr.bf16.mxu0 %v1021_v0 }
  0x76   :  { %686 = vmatpush1.bf16.msra.mxu1 %v1016_v1  ;;  %727 = vmatpush1.bf16.msra.mxu0 %v1019_v2 }
  0x77   :  { %687 = vmatprep.subr.bf16.mxu1 %v1024_v3  ;;  %728 = vmatprep.subr.bf16.mxu0 %v1027_v4 }
  0x7a   :  { %688 = vmatpush1.bf16.msra.mxu1 %v1022_v5  ;;  %729 = vmatpush1.bf16.msra.mxu0 %v1025_v6 }
  0x7b   :  { %689 = vmatprep.subr.bf16.mxu1 %v1030_v7  ;;  %730 = vmatprep.subr.bf16.mxu0 %v1033_v8  ;;  %v913_v8 = vcombine.low %v749_v54, %v749_v54 }
  0x7e   :  { %690 = vmatpush1.bf16.msra.mxu1 %v1028_v9  ;;  %731 = vmatpush1.bf16.msra.mxu0 %v1031_v10 }
  0x7f   :  { %691 = vmatprep.subr.bf16.mxu1 %v1036_v11  ;;  %732 = vmatprep.subr.bf16.mxu0 %v1039_v12 }
  0x82   :  { %692 = vmatpush1.bf16.msra.mxu1 %v1034_v13  ;;  %733 = vmatpush1.bf16.msra.mxu0 %v1037_v14 }
  0x83   :  { %693 = vmatprep.subr.bf16.mxu1 %v1042_v15  ;;  %734 = vmatprep.subr.bf16.mxu0 %v1045_v16 }
  0x86   :  { %694 = vmatpush1.bf16.msra.mxu1 %v1040_v17  ;;  %735 = vmatpush1.bf16.msra.mxu0 %v1043_v18 }
 0x11c   :  { %v219_v30 = vpop.f32.mrb[0].mxu0  ;;  %v260_v31 = vpop.f32.mrb[0].mxu1 }
 0x11d   :  { %v220_v32 = vadd.f32 %v219_v30, %v84_v26  ;;  %v261_v33 = vadd.f32 %v260_v31, %v92_v27  ;;  %v221_v34 = vpop.f32.mrb[1].mxu0  ;;  %v262_v35 = vpop.f32.mrb[1].mxu1 }
 0x11e   :  { %v222_v36 = vadd.f32 %v221_v34, %v88_v28  ;;  %v263_v37 = vadd.f32 %v262_v35, %v96_v29  ;;  %v223_v38 = vpop.f32.mrb[2].mxu0  ;;  %v264_v39 = vpop.f32.mrb[2].mxu1 }
 0x11f   :  { %v267_v40 = vmul.f32 0.01, %v220_v32  ;;  %v269_v41 = vmul.f32 0.01, %v261_v33  ;;  %v224_v42 = vpop.f32.mrb[3].mxu0  ;;  %v265_v43 = vpop.f32.mrb[3].mxu1 }
 0x120   :  { %v268_v44 = vmul.f32 0.01, %v222_v36  ;;  %v270_v45 = vmul.f32 0.01, %v263_v37 }
 0x121   :  { %v271_v46 = vmax.f32 %v220_v32, %v267_v40  ;;  %v273_v47 = vmax.f32 %v261_v33, %v269_v41 }
 0x122   :  { %v272_v48 = vmax.f32 %v222_v36, %v268_v44  ;;  %v274_v49 = vmax.f32 %v263_v37, %v270_v45 }
 0x123   :  { %v275_v52 = vpack.c.bf16 %v271_v46, %v271_v46  ;;  %v277_v53 = vpack.c.bf16 %v273_v47, %v273_v47 }
 0x124   :  { %v276_v50 = vpack.c.bf16 %v272_v48, %v272_v48  ;;  %v278_v51 = vpack.c.bf16 %v274_v49, %v274_v49 }
 0x126   :  { %695 = vmatprep.mubr.bf16.mxu1 %v276_v50  ;;  %736 = vmatprep.mubr.bf16.mxu0 %v278_v51 }
 0x127   :  { %696 = vmatmul.mubr.bf16.vlgmr.msra.gmra.mrb[4].mxu1 %v275_v52  ;;  %737 = vmatmul.mubr.bf16.vlgmr.msra.gmra.mrb[4].mxu0 %v277_v53 }
 0x128   :  { %791 = vmatprep.mubr.bf16.mxu1 %v914_v55 }
 0x1fa   :  { %v697_v56 = vpop.f32.mrb[4].mxu1  ;;  %v738_v57 = vpop.f32.mrb[4].mxu0 }
 0x1fb   :  { %v739_v58 = vadd.f32 %v738_v57, %v697_v56  ;;  %v699_v59 = vpop.f32.mrb[5].mxu1  ;;  %v740_v60 = vpop.f32.mrb[5].mxu0 }
 0x1fc   :  { %v741_v61 = vadd.f32 %v740_v60, %v699_v59  ;;  %v701_v62 = vpop.f32.mrb[6].mxu1  ;;  %v742_v63 = vpop.f32.mrb[6].mxu0 }
 0x1fd   :  { %v745_v0 = vmul.f32 0.01, %v739_v58  ;;  %v702_v1 = vpop.f32.mrb[7].mxu1  ;;  %v743_v2 = vpop.f32.mrb[7].mxu0 }
 0x1fe   :  { %v746_v3 = vmul.f32 0.01, %v741_v61 }
 0x1ff   :  { %v747_v4 = vmax.f32 %v739_v58, %v745_v0 }
 0x200   :  { %v748_v5 = vmax.f32 %v741_v61, %v746_v3 }
 0x201   :  { %v750_v7 = vpack.c.bf16 %v747_v4, %v747_v4 }
 0x202   :  { %v751_v6 = vpack.c.bf16 %v748_v5, %v748_v5 }
 0x204   :  { %759 = vmatprep.subr.bf16.mxu1 %v751_v6 }
 0x205   :  { %760 = vmatpush1.bf16.xpose.msra.mxu1 %v750_v7 }
 0x20c   :  { %792 = vmatmul.mubr.bf16.vlgmr.msra.gmra.mrb[8].mxu1 %v913_v8 }
 0x2df   :  { %v793_v9 = vpop.f32.mrb[8].mxu1 }
 0x2e0   :  { %v800_v10 = vmin.f32 %v793_v9, 20.0  ;;  %v795_v11 = vpop.f32.mrb[9].mxu1  ;;  %vm799_vm3 = vcmp.gt.f32.partialorder %v793_v9, 20.0 }
 0x2e1   :  { %v796_v12 = vpop.f32.mrb[10].mxu1 }
 0x2e2   :  { %v801_v13 = vmul.f32 1.442695, %v800_v10  ;;  %v797_v14 = vpop.f32.mrb[11].mxu1 }
 0x2e4   :  { %1048 = vpow2.f32 %v801_v13 }
 0x2ee   :  { %v1049_v15 = vpop.eup %1048 }
 0x2ef   :  { %v803_v16 = vadd.f32 1.0, %v1049_v15  ;;  %v806_v17 = vmul.f32 -0.5, %v1049_v15  ;;  %v809_v19 = vand.u32 2147483647, %v1049_v15 }
 0x2f1   :  { %1050 = vlog2.f32 %v803_v16  ;;  %v807_v18 = vadd.f32 1.0, %v806_v17  ;;  %vm810_vm1 = vcmp.lt.f32.partialorder %v809_v19, 0.0004427343 }
 0x2f3   :  { %v808_v22 = vmul.f32 %v1049_v15, %v807_v18 }
 0x2fb   :  { %v1051_v20 = vpop.eup %1050 }
 0x2fc   :  { %v805_v21 = vmul.f32 0.6931472, %v1051_v20 }
 0x2fe   :  { %v811_v23 = vsel %vm810_vm1, %v808_v22, %v805_v21 }
 0x2ff   :  { %v812_v24 = vsel %vm799_vm3, %v793_v9, %v811_v23 }
 0x300   :  { %814 = vst.msk [vmem:[#allocation8] sm:$0xff] %vm813_vm2, %v812_v24 }
 0x301   :  { %1129 = shalt.err (!%p1126_p0)
}
 0x302   :  { %s1130_s12 = scalar_lea.hbm %s1244_s5, 128 }
 0x303   :  { %p1131_p1 = scmp.ne.s32.totalorder %s1244_s5, %s1130_s12  ;;  %p1134_p2 = scmp.lt.u32.totalorder %s1130_s12, %s1244_s5 }
 0x305   :  { %p1136_p3 = pnand %p1134_p2, %p1131_p1 }
 0x307   :  { %1139 = shalt.err (!%p1136_p3)
}
 0x308   :  { %824 = dma.vmem_to_hbm [thread:$0]  %s822_s8, 128, %s1244_s5, [#allocation4]  }
 0x309   :  { %1144 = dma.done.wait [#allocation4], 128  }
 0x30a   :  { %1145 = vsyncadd [#allocation4], 4294967168 }
 0x30b   :  { %828 = vsyncpa [#allocation3], 1 }
 0x30c   :  { %829 = vsyncpa [#allocation6], 1 }
 0x30d   :  { %830 = vsyncpa [#allocation4], 1 }

</bundles_post_ra>
